<compile_context>
chip_gen: v7x
topology: tpu7x:2x2x1
jax: 0.10.0
libtpu: 0.0.40
codegen_flags: <defaults>
</compile_context>

<pallas_src>
import numpy as np
import jax
import jax.numpy as jnp
from jax import lax
from jax.experimental import pallas as pl
from jax.experimental.pallas import tpu as pltpu

KH = KW = 4
STRIDE = 2
PAD = 1


def _round_up(x, m):
    return (x + m - 1) // m * m


def _block_vmem_bytes(shape, itemsize):
    """Approx. padded VMEM footprint of one buffer holding `shape`."""
    s = list(shape)
    if len(s) >= 1:
        s[-1] = _round_up(s[-1], 128)
    if len(s) >= 2:
        sub = {4: 8, 2: 16, 1: 32}.get(itemsize, 8)
        s[-2] = _round_up(s[-2], sub)
    return int(np.prod(s)) * itemsize


def _make_kernel(TOH, Wo, Ws, C, C4):
    """Kernel computing TOH output rows (full width) of one image."""

    def kernel(sa_ref, sb_ref, w_ref, b_ref, o_ref, rows_ref):
        # sa_ref : (1, TOH, Ws, C4) bf16  -- S rows [TOH*j, TOH*(j+1))
        # sb_ref : (1, 1,   Ws, C4) bf16  -- halo row TOH*(j+1) of S
        # w_ref  : (4, C4, C)       bf16  -- repacked conv weights (4 taps)
        # b_ref  : (1, C)           f32   -- bias
        # o_ref  : (1, TOH, Wo, C)  f32
        # rows_ref: VMEM scratch (TOH+1, Ws, C4) bf16 (halo-joined window).
        # bf16 scratch: no dtype round-trips; the MXU consumes the bf16
        # slices directly, accumulation stays in f32.
        rows_ref[0:TOH] = sa_ref[0]
        rows_ref[TOH:TOH + 1] = sb_ref[0]

        # 4 shifted matmuls (row shift a, col shift b) == the 4x4 s2 conv.
        # Clean `acc = acc + dot(...)` chain (MRB-friendly on v7x; on
        # v5e/v6e the 3 extra f32 adds are cheap vs. the MXU work).
        acc = jnp.zeros((TOH * Wo, C), jnp.float32)
        for a in range(2):
            for b in range(2):
                tap = rows_ref[a:a + TOH, b:b + Wo, :].reshape(TOH * Wo, C4)
                acc = acc + jnp.dot(tap, w_ref[2 * a + b],
                                    preferred_element_type=jnp.float32)

        acc = acc + b_ref[...]                       # f32 bias add (VPU-safe on v5e)
        o_ref[0] = acc.reshape(TOH, Wo, C).astype(o_ref.dtype)

    return kernel


def downsample_pallas(x_nchw, weight_oihw, bias):
    """Conv2d(C, C, k=4, s=2, p=1) forward, matching PyTorch semantics.

    x_nchw      : (N, C, H, W)      float32
    weight_oihw : (C, C, 4, 4)      float32 (PyTorch OIHW layout)
    bias        : (C,)              float32
    returns     : (N, C, H//2, W//2) float32
    """
    N, C, H, W = x_nchw.shape
    assert H % 2 == 0 and W % 2 == 0, "stride-2 downsample expects even H, W"
    Ho, Wo = H // 2, W // 2
    Hs, Ws = Ho + 1, Wo + 1          # space-to-depth grid of the padded input
    C4 = 4 * C
    out_dtype = x_nchw.dtype

    # ---- host-side layout (one fused pad/reshape/transpose/cast pass) ----
    # S[n, i, j, (2p+q)*C + c] = xpad[n, c, 2i+p, 2j+q]
    xpad = jnp.pad(x_nchw, ((0, 0), (0, 0), (PAD, PAD), (PAD, PAD)))
    s = xpad.reshape(N, C, Hs, 2, Ws, 2)
    s = jnp.transpose(s, (0, 2, 4, 3, 5, 1)).reshape(N, Hs, Ws, C4)
    s = s.astype(jnp.bfloat16)                      # halve HBM bytes of streamed operand

    # Weights: OIHW -> W4[2a+b, (2p+q)*C + cin, cout]  (kh = 2a+p, kw = 2b+q)
    w = weight_oihw.reshape(C, C, 2, 2, 2, 2)       # (cout, cin, a, p, b, q)
    w4 = jnp.transpose(w, (2, 4, 3, 5, 1, 0)).reshape(4, C4, C).astype(jnp.bfloat16)
    b_row = bias.reshape(1, C).astype(jnp.float32)

    # ---- tiling: TOH output rows per grid step, ~1024-row GEMM tiles ----
    TOH = min(Ho, max(2, 1024 // max(Wo, 1)))       # never collapses to 1 for wide images
    TOH = max(TOH, 1)

    try:
        phys_vmem = int(pltpu.get_tpu_info().vmem_capacity_bytes)
    except Exception:
        phys_vmem = 64 * 1024 * 1024                # conservative (v7x per-core VMEM)
    vmem_limit = max(32 * 1024 * 1024,
                     min(int(phys_vmem * 3 // 4), 112 * 1024 * 1024))
    budget = vmem_limit - 4 * 1024 * 1024

    w_buf = _block_vmem_bytes((4, C4, C), 2)
    # Single-buffer the constant-index weight block when double-buffering it
    # would eat a large share of VMEM (large C on v7x).
    single_buf_w = (2 * w_buf > budget // 3)
    w_bufs = 1 if single_buf_w else 2

    def step_bytes(toh):
        return (2 * _block_vmem_bytes((1, toh, Ws, C4), 2)     # row strip (x2 buf)
                + 2 * _block_vmem_bytes((1, 1, Ws, C4), 2)     # halo row
                + w_bufs * w_buf                               # weights
                + 2 * _block_vmem_bytes((1, C), 4)             # bias
                + 2 * _block_vmem_bytes((1, toh, Wo, C), 4)    # output block
                + _block_vmem_bytes((toh + 1, Ws, C4), 2))     # bf16 scratch

    while TOH > 1 and step_bytes(TOH) > budget:
        TOH = max(1, TOH // 2)

    n_row_blocks = pl.cdiv(Ho, TOH)
    Ho_pad = n_row_blocks * TOH
    if Ho_pad + 1 > Hs:                              # pad rows so every block (+ halo) is in range
        s = jnp.pad(s, ((0, 0), (0, Ho_pad + 1 - Hs), (0, 0), (0, 0)))

    grid = (N, n_row_blocks)

    # NOTE: the halo BlockSpec relies on block height == 1 so that the block
    # index returned by its index_map equals the *element* row offset
    # TOH*(j+1); do not change the halo block height without fixing the map.
    weight_spec = (pl.BlockSpec((4, C4, C), lambda n, j: (0, 0, 0),
                                pipeline_mode=pl.Buffered(1))
                   if single_buf_w else
                   pl.BlockSpec((4, C4, C), lambda n, j: (0, 0, 0)))
    in_specs = [
        # main row strip: S rows [TOH*j, TOH*(j+1))
        pl.BlockSpec((1, TOH, Ws, C4), lambda n, j: (n, j, 0, 0)),
        # halo row: S row TOH*(j+1)
        pl.BlockSpec((1, 1, Ws, C4), lambda n, j: (n, TOH * (j + 1), 0, 0)),
        weight_spec,
        pl.BlockSpec((1, C), lambda n, j: (0, 0)),
    ]
    out_specs = pl.BlockSpec((1, TOH, Wo, C), lambda n, j: (n, j, 0, 0))

    flops = 2 * N * Ho * Wo * (KH * KW * C) * C
    bytes_accessed = (s.size * 2) + (w4.size * 2) + (b_row.size * 4) \
        + N * Ho_pad * Wo * C * 4
    cost = pl.CostEstimate(flops=flops, transcendentals=0,
                           bytes_accessed=bytes_accessed)

    out_padded = pl.pallas_call(
        _make_kernel(TOH, Wo, Ws, C, C4),
        out_shape=jax.ShapeDtypeStruct((N, Ho_pad, Wo, C), jnp.float32),
        grid_spec=pltpu.PrefetchScalarGridSpec(
            num_scalar_prefetch=0,
            grid=grid,
            in_specs=in_specs,
            out_specs=out_specs,
            scratch_shapes=[pltpu.VMEM((TOH + 1, Ws, C4), jnp.bfloat16)],
        ),
        compiler_params=pltpu.CompilerParams(
            dimension_semantics=("parallel", "parallel"),   # megacore / v7x 2-TC split
            vmem_limit_bytes=vmem_limit,
            # allow XLA to fuse the pad/space-to-depth/bf16-cast producer of
            # `s` into the kernel's operand reads (host layout passes are the
            # dominant HBM cost on this memory-bound op).
            allow_input_fusion=[True, True, False, False],
        ),
        cost_estimate=cost,
    )(s, s, w4, b_row)

    out = out_padded[:, :Ho]                                   # (N, Ho, Wo, C)
    return jnp.transpose(out, (0, 3, 1, 2)).astype(out_dtype)  # back to NCHW


def _reference_conv(x_nchw, weight_oihw, bias):
    # Pure-JAX f32 reference (lax conv) for correctness checking.
    out = lax.conv_general_dilated(
        x_nchw, weight_oihw,
        window_strides=(STRIDE, STRIDE),
        padding=((PAD, PAD), (PAD, PAD)),
        dimension_numbers=("NCHW", "OIHW", "NCHW"),
    )
    return out + bias.reshape(1, -1, 1, 1)


if __name__ == "__main__":
    # Small shapes consistent with the module's forward: NCHW input.
    N, C, H, W = 2, 4, 16, 16
    key = jax.random.PRNGKey(0)
    kx, kw_, kb = jax.random.split(key, 3)

    x = jax.random.normal(kx, (N, C, H, W), dtype=jnp.float32)

    # Deterministic parameter init mirroring nn.Conv2d default (uniform +-1/sqrt(fan_in)).
    fan_in = C * KH * KW
    bound = 1.0 / np.sqrt(fan_in)
    weight = jax.random.uniform(kw_, (C, C, KH, KW), jnp.float32, -bound, bound)
    bias = jax.random.uniform(kb, (C,), jnp.float32, -bound, bound)

    fwd = jax.jit(downsample_pallas)
    out = jax.block_until_ready(fwd(x, weight, bias))

    ref = jax.block_until_ready(_reference_conv(x, weight, bias))
    assert out.shape == (N, C, H // 2, W // 2), out.shape
    # bf16 operand rounding (f32 accumulation) -> loosened tolerance vs f32 reference.
    np.testing.assert_allclose(np.asarray(out), np.asarray(ref), atol=3e-2, rtol=3e-2)

    print("KERNEL_OK")
</pallas_src>

<mosaic_0001>
module attributes {stable_mosaic.version = 11 : i64} {
  func.func @kernel(%arg0: i32, %arg1: i32, %arg2: memref<1x8x9x16xbf16, #tpu.memory_space<vmem>>, %arg3: memref<1x1x9x16xbf16, #tpu.memory_space<vmem>>, %arg4: memref<4x16x4xbf16, #tpu.memory_space<vmem>>, %arg5: memref<1x4xf32, #tpu.memory_space<vmem>>, %arg6: memref<1x8x8x4xf32, #tpu.memory_space<vmem>>, %arg7: memref<9x9x16xbf16, #tpu.memory_space<vmem>>) attributes {dimension_semantics = [#tpu.dimension_semantics<parallel>, #tpu.dimension_semantics<parallel>], iteration_bounds = array<i64: 2, 1>, scalar_prefetch = 0 : i64, scratch_operands = 1 : i64, tpu.core_type = #tpu.core_type<tc>, window_params = [{transform_indices = @transform_0, window_bounds = array<i64: 1, 8, 9, 16>}, {transform_indices = @transform_1, window_bounds = array<i64: 1, 1, 9, 16>}, {pipeline_mode = #tpu.pipeline_mode<synchronous>, transform_indices = @transform_2, window_bounds = array<i64: 4, 16, 4>}, {pipeline_mode = #tpu.pipeline_mode<synchronous>, transform_indices = @transform_3, window_bounds = array<i64: 1, 4>}, {transform_indices = @transform_4, window_bounds = array<i64: 1, 8, 8, 4>}]} {
    %c0 = arith.constant 0 : index
    %c0_0 = arith.constant 0 : index
    %c0_1 = arith.constant 0 : index
    %c0_2 = arith.constant 0 : index
    %0 = vector.load %arg2[%c0, %c0_0, %c0_1, %c0_2] : memref<1x8x9x16xbf16, #tpu.memory_space<vmem>>, vector<1x8x9x16xbf16>
    %1 = vector.shape_cast %0 : vector<1x8x9x16xbf16> to vector<8x9x16xbf16>
    %c0_3 = arith.constant 0 : index
    %c0_4 = arith.constant 0 : index
    %c0_5 = arith.constant 0 : index
    %2 = vector.load %arg7[%c0_3, %c0_4, %c0_5] : memref<9x9x16xbf16, #tpu.memory_space<vmem>>, vector<8x9x16xbf16>
    tpu.vector_store %arg7[%c0_3, %c0_4, %c0_5], %1 {strides = array<i32>} : memref<9x9x16xbf16, #tpu.memory_space<vmem>>, vector<8x9x16xbf16>,
    %c0_6 = arith.constant 0 : index
    %c0_7 = arith.constant 0 : index
    %c0_8 = arith.constant 0 : index
    %c0_9 = arith.constant 0 : index
    %3 = vector.load %arg3[%c0_6, %c0_7, %c0_8, %c0_9] : memref<1x1x9x16xbf16, #tpu.memory_space<vmem>>, vector<1x1x9x16xbf16>
    %4 = vector.shape_cast %3 : vector<1x1x9x16xbf16> to vector<1x9x16xbf16>
    %c8 = arith.constant 8 : index
    %c0_10 = arith.constant 0 : index
    %c0_11 = arith.constant 0 : index
    %5 = vector.load %arg7[%c8, %c0_10, %c0_11] : memref<9x9x16xbf16, #tpu.memory_space<vmem>>, vector<1x9x16xbf16>
    tpu.vector_store %arg7[%c8, %c0_10, %c0_11], %4 {strides = array<i32>} : memref<9x9x16xbf16, #tpu.memory_space<vmem>>, vector<1x9x16xbf16>,
    %cst = arith.constant 0.000000e+00 : f32
    %6 = vector.broadcast %cst : f32 to vector<64x4xf32>
    %c0_12 = arith.constant 0 : index
    %c0_13 = arith.constant 0 : index
    %c0_14 = arith.constant 0 : index
    %7 = vector.load %arg7[%c0_12, %c0_13, %c0_14] : memref<9x9x16xbf16, #tpu.memory_space<vmem>>, vector<8x8x16xbf16>
    %8 = vector.shape_cast %7 : vector<8x8x16xbf16> to vector<64x16xbf16>
    %c0_15 = arith.constant 0 : index
    %c0_16 = arith.constant 0 : index
    %c0_17 = arith.constant 0 : index
    %9 = vector.load %arg4[%c0_15, %c0_16, %c0_17] : memref<4x16x4xbf16, #tpu.memory_space<vmem>>, vector<1x16x4xbf16>
    %10 = vector.shape_cast %9 : vector<1x16x4xbf16> to vector<16x4xbf16>
    %cst_18 = arith.constant dense<0.000000e+00> : vector<64x4xf32>
    %11 = tpu.matmul %8, %10, %cst_18 {dimension_numbers = #tpu.dot_dimension_numbers<[1], [0], [0], [1], [0, 0, 1, 1], [], []>} : vector<64x16xbf16>, vector<16x4xbf16>, vector<64x4xf32> -> vector<64x4xf32>
    %12 = arith.addf %6, %11 : vector<64x4xf32>
    %c0_19 = arith.constant 0 : index
    %c1 = arith.constant 1 : index
    %c0_20 = arith.constant 0 : index
    %13 = vector.load %arg7[%c0_19, %c1, %c0_20] : memref<9x9x16xbf16, #tpu.memory_space<vmem>>, vector<8x8x16xbf16>
    %14 = vector.shape_cast %13 : vector<8x8x16xbf16> to vector<64x16xbf16>
    %c1_21 = arith.constant 1 : index
    %c0_22 = arith.constant 0 : index
    %c0_23 = arith.constant 0 : index
    %15 = vector.load %arg4[%c1_21, %c0_22, %c0_23] : memref<4x16x4xbf16, #tpu.memory_space<vmem>>, vector<1x16x4xbf16>
    %16 = vector.shape_cast %15 : vector<1x16x4xbf16> to vector<16x4xbf16>
    %cst_24 = arith.constant dense<0.000000e+00> : vector<64x4xf32>
    %17 = tpu.matmul %14, %16, %cst_24 {dimension_numbers = #tpu.dot_dimension_numbers<[1], [0], [0], [1], [0, 0, 1, 1], [], []>} : vector<64x16xbf16>, vector<16x4xbf16>, vector<64x4xf32> -> vector<64x4xf32>
    %18 = arith.addf %12, %17 : vector<64x4xf32>
    %c1_25 = arith.constant 1 : index
    %c0_26 = arith.constant 0 : index
    %c0_27 = arith.constant 0 : index
    %19 = vector.load %arg7[%c1_25, %c0_26, %c0_27] : memref<9x9x16xbf16, #tpu.memory_space<vmem>>, vector<8x8x16xbf16>
    %20 = vector.shape_cast %19 : vector<8x8x16xbf16> to vector<64x16xbf16>
    %c2 = arith.constant 2 : index
    %c0_28 = arith.constant 0 : index
    %c0_29 = arith.constant 0 : index
    %21 = vector.load %arg4[%c2, %c0_28, %c0_29] : memref<4x16x4xbf16, #tpu.memory_space<vmem>>, vector<1x16x4xbf16>
    %22 = vector.shape_cast %21 : vector<1x16x4xbf16> to vector<16x4xbf16>
    %cst_30 = arith.constant dense<0.000000e+00> : vector<64x4xf32>
    %23 = tpu.matmul %20, %22, %cst_30 {dimension_numbers = #tpu.dot_dimension_numbers<[1], [0], [0], [1], [0, 0, 1, 1], [], []>} : vector<64x16xbf16>, vector<16x4xbf16>, vector<64x4xf32> -> vector<64x4xf32>
    %24 = arith.addf %18, %23 : vector<64x4xf32>
    %c1_31 = arith.constant 1 : index
    %c1_32 = arith.constant 1 : index
    %c0_33 = arith.constant 0 : index
    %25 = vector.load %arg7[%c1_31, %c1_32, %c0_33] : memref<9x9x16xbf16, #tpu.memory_space<vmem>>, vector<8x8x16xbf16>
    %26 = vector.shape_cast %25 : vector<8x8x16xbf16> to vector<64x16xbf16>
    %c3 = arith.constant 3 : index
    %c0_34 = arith.constant 0 : index
    %c0_35 = arith.constant 0 : index
    %27 = vector.load %arg4[%c3, %c0_34, %c0_35] : memref<4x16x4xbf16, #tpu.memory_space<vmem>>, vector<1x16x4xbf16>
    %28 = vector.shape_cast %27 : vector<1x16x4xbf16> to vector<16x4xbf16>
    %cst_36 = arith.constant dense<0.000000e+00> : vector<64x4xf32>
    %29 = tpu.matmul %26, %28, %cst_36 {dimension_numbers = #tpu.dot_dimension_numbers<[1], [0], [0], [1], [0, 0, 1, 1], [], []>} : vector<64x16xbf16>, vector<16x4xbf16>, vector<64x4xf32> -> vector<64x4xf32>
    %30 = arith.addf %24, %29 : vector<64x4xf32>
    %c0_37 = arith.constant 0 : index
    %c0_38 = arith.constant 0 : index
    %31 = vector.load %arg5[%c0_37, %c0_38] : memref<1x4xf32, #tpu.memory_space<vmem>>, vector<1x4xf32>
    %32 = vector.broadcast %31 : vector<1x4xf32> to vector<64x4xf32>
    %33 = arith.addf %30, %32 : vector<64x4xf32>
    %34 = vector.shape_cast %33 : vector<64x4xf32> to vector<8x8x4xf32>
    %c0_39 = arith.constant 0 : index
    %c0_40 = arith.constant 0 : index
    %c0_41 = arith.constant 0 : index
    %c0_42 = arith.constant 0 : index
    %35 = vector.load %arg6[%c0_39, %c0_40, %c0_41, %c0_42] : memref<1x8x8x4xf32, #tpu.memory_space<vmem>>, vector<1x8x8x4xf32>
    %36 = vector.shape_cast %35 : vector<1x8x8x4xf32> to vector<8x8x4xf32>
    %37 = vector.shape_cast %34 : vector<8x8x4xf32> to vector<1x8x8x4xf32>
    tpu.vector_store %arg6[%c0_39, %c0_40, %c0_41, %c0_42], %37 {strides = array<i32>} : memref<1x8x8x4xf32, #tpu.memory_space<vmem>>, vector<1x8x8x4xf32>,
    return
  }
  func.func @transform_0(%arg0: i32, %arg1: i32) -> (i32, i32, i32, i32) {
    %c0_i32 = arith.constant 0 : i32
    %c0_i32_0 = arith.constant 0 : i32
    %c0_i32_1 = arith.constant 0 : i32
    return %arg0, %arg1, %c0_i32, %c0_i32_0 : i32, i32, i32, i32
  }
  func.func @transform_1(%arg0: i32, %arg1: i32) -> (i32, i32, i32, i32) {
    %c1_i32 = arith.constant 1 : i32
    %0 = arith.addi %arg1, %c1_i32 : i32
    %c8_i32 = arith.constant 8 : i32
    %1 = arith.muli %c8_i32, %0 : i32
    %c0_i32 = arith.constant 0 : i32
    %c0_i32_0 = arith.constant 0 : i32
    %c0_i32_1 = arith.constant 0 : i32
    return %arg0, %1, %c0_i32, %c0_i32_0 : i32, i32, i32, i32
  }
  func.func @transform_2(%arg0: i32, %arg1: i32) -> (i32, i32, i32) {
    %c0_i32 = arith.constant 0 : i32
    %c0_i32_0 = arith.constant 0 : i32
    %c0_i32_1 = arith.constant 0 : i32
    %c0_i32_2 = arith.constant 0 : i32
    return %c0_i32, %c0_i32_0, %c0_i32_1 : i32, i32, i32
  }
  func.func @transform_3(%arg0: i32, %arg1: i32) -> (i32, i32) {
    %c0_i32 = arith.constant 0 : i32
    %c0_i32_0 = arith.constant 0 : i32
    %c0_i32_1 = arith.constant 0 : i32
    return %c0_i32, %c0_i32_0 : i32, i32
  }
  func.func @transform_4(%arg0: i32, %arg1: i32) -> (i32, i32, i32, i32) {
    %c0_i32 = arith.constant 0 : i32
    %c0_i32_0 = arith.constant 0 : i32
    %c0_i32_1 = arith.constant 0 : i32
    return %arg0, %arg1, %c0_i32, %c0_i32_0 : i32, i32, i32, i32
  }
}

</mosaic_0001>

<bundles_post_ra>
// kernel: downsample_pallas.1
= control target key start
LH: loop header
LB: loop body
LE: loop exit
PB: predicated region body
PF: predicated region fallthrough
CT: control target
= control target key end

     0   :  { %s1428_s15 = smov 0   ;;  %s1430_s16 = smov 0   ;;  %s1652_s0 = inlined_call_operand.vmem [shape: bf16[2,9,9,16], index: 0, kind: input, shape index: {}, may-alias: {0,1}]   ;;  %s1653_s1 = inlined_call_operand.vmem [shape: bf16[2,9,9,16], index: 1, kind: input, shape index: {}, may-alias: {0,1}]   ;;  %s1654_s2 = inlined_call_operand.vmem [shape: bf16[4,16,4], index: 2, kind: input, shape index: {}]   ;;  %s1655_s3 = inlined_call_operand.vmem [shape: f32[1,4], index: 3, kind: input, shape index: {}]   ;;  %s1656_s4 = inlined_call_operand.vmem [shape: f32[2,8,8,4], index: 4, kind: output, shape index: {}]  }
   0x1   :  { %s1432_s17 = smov 0  }
   0x2 LB: > { %s26_s18 = sadd.s32 1, %s1397_s16  ;;  %p1204_p0 = scmp.ge.s32.totalorder %s1401_s17, 1  ;;  %s1401_s17 = sphi %s1432_s17, %s14_s17   ;;  %s1397_s16 = sphi %s1430_s16, %s1662_s16   ;;  %s1393_s15 = sphi %s1428_s15, %s1661_s15  }
   0x3   : > { %p28_p1 = scmp.ge.s32.totalorder %s26_s18, 2  ;;  %p218_p2 = scmp.lt.s32.totalorder %s1401_s17, 3 }
   0x5   : > { %s1664_s18 = smov (%p28_p1, %s26_s18), 0  ;;  %p219_p3 = pnand %p1204_p0, %p218_p2 }
   0x6   : > { %v1368_v0 = vld [vmem:[%s1654_s2 + $0x10] sm:$0xff] (!%p219_p3)   ;;  %p275_p4 = scmp.lt.s32.totalorder (!%p219_p3), %s1393_s15, 1  ;;  %v1371_v1 = vld [vmem:[%s1654_s2 + $0x8] sm:$0xff] (!%p219_p3)   ;;  %v1457_v2 = vld [vmem:[%s1654_s2] sm:$0xff] (!%p219_p3)   ;;  %vm332_vm0 = vcmask (!%p219_p3), 122880   ;;  %vm330_vm2 = vcmask (!%p219_p3), 125952  }
   0x7   : > { %222 = sbr.rel (%p219_p3) target bundleno = 305 (0x131), region = 36  ;;  %1297 = vmatprep.subr.bf16.mxu0 (!%p219_p3), %v1368_v0  ;;  %vm333_vm1 = vsmask.f32 (!%p219_p3), 256  ;;  %1277 = vmatprep.subr.bf16.mxu1 (!%p219_p3), %v1371_v1  ;;  %v1463_v3 = vld [vmem:[%s1654_s2 + $0x18] sm:$0xff] (!%p219_p3)   ;;  %v335_v4 = vld [vmem:[#allocation2 + $0x4] sm:$0x1] (!%p219_p3) }
   0x8   : > { %1298 = vmatpush3.bf16.msra.mxu0 (!%p219_p3), %v1368_v0  ;;  %1278 = vmatpush3.bf16.msra.mxu1 (!%p219_p3), %v1371_v1  ;;  %v339_v5 = vld [vmem:[#allocation2 + $0xc] sm:$0x1] (!%p219_p3)  ;;  %vm527_vm3 = vcmask (!%p219_p3), 130048   ;;  %vm1470_vm4 = vmand (!%p219_p3), %vm332_vm0, %vm333_vm1  ;;  %v370_v7 = vld [vmem:[#allocation2 + $0x44] sm:$0x1] (!%p219_p3)  ;;  %vm1080_vm8 = vcmask (!%p219_p3), 31744  }
   0x9   : > { %1287 = vmatprep.subr.bf16.mxu1 (!%p219_p3), %v1457_v2  ;;  %1307 = vmatprep.subr.bf16.mxu0 (!%p219_p3), %v1463_v3  ;;  %v343_v25 = vld [vmem:[#allocation2 + $0x14] sm:$0x1] (!%p219_p3)  ;;  %v347_v27 = vld [vmem:[#allocation2 + $0x1c] sm:$0x1] (!%p219_p3)  ;;  %vm391_vm5 = vsmask.f32 (!%p219_p3), 3328 }
   0xa   : > { %vm392_vm6 = vsmask.f32 (!%p219_p3), 7440  ;;  %v351_v31 = vld [vmem:[#allocation2 + $0x24] sm:$0x1] (!%p219_p3)  ;;  %v355_v32 = vld [vmem:[#allocation2 + $0x2c] sm:$0x1] (!%p219_p3) }
   0xb   : > { %v359_v37 = vld [vmem:[#allocation2 + $0x34] sm:$0x1] (!%p219_p3)  ;;  %v363_v38 = vld [vmem:[#allocation2 + $0x3c] sm:$0x1] (!%p219_p3)  ;;  %vm1542_vm7 = vmor (!%p219_p3), %vm391_vm5, %vm392_vm6 }
   0xe   : > { %s1666_s15 = smov (!%p275_p4, %s1393_s15), 1 }
   0xf   : > { %s1341_s25 = smul.u32 72, %s1666_s15  ;;  %s1256_s9 = sshll.u32 %s1666_s15, 6 }
  0x10   : > { %s1625_s14 = scalar_lea.vmem %s1656_s4, %s1256_s9 }
  0x11   : > { %s1468_s30 = scalar_lea.vmem %s1652_s0, %s1341_s25  ;;  %s1255_s5 = sadd.s32 64, %s1341_s25 }
  0x12   : > { %v316_v8 = vld [vmem:[%s1468_s30 + $0x8] sm:$0xf]  ;;  %v318_v9 = vld [vmem:[%s1468_s30 + $0x10] sm:$0xf]  ;;  %v320_v10 = vld [vmem:[%s1468_s30 + $0x18] sm:$0xf]  ;;  %s300_s8 = scalar_lea.vmem %s1653_s1, %s1255_s5 }
  0x13   : > { %338 = vst.msk [vmem:[#allocation2 + $0x8] sm:$0xf] %vm330_vm2, %v316_v8  ;;  %342 = vst.msk [vmem:[#allocation2 + $0x10] sm:$0xf] %vm330_vm2, %v318_v9  ;;  %v322_v11 = vld [vmem:[%s1468_s30 + $0x20] sm:$0xf] }
  0x14   : > { %346 = vst.msk [vmem:[#allocation2 + $0x18] sm:$0xf] %vm330_vm2, %v320_v10  ;;  %v324_v12 = vld [vmem:[%s1468_s30 + $0x28] sm:$0xf]  ;;  %v326_v13 = vld [vmem:[%s1468_s30 + $0x30] sm:$0xf] }
  0x15   : > { %350 = vst.msk [vmem:[#allocation2 + $0x20] sm:$0xf] %vm330_vm2, %v322_v11  ;;  %354 = vst.msk [vmem:[#allocation2 + $0x28] sm:$0xf] %vm330_vm2, %v324_v12  ;;  %v314_v14 = vld [vmem:[%s1468_s30] sm:$0xf] }
  0x16   : > { %358 = vst.msk [vmem:[#allocation2 + $0x30] sm:$0xf] %vm330_vm2, %v326_v13  ;;  %v315_v15 = vld [vmem:[%s1468_s30 + $0x4] sm:$0x1]  ;;  %v317_v16 = vld [vmem:[%s1468_s30 + $0xc] sm:$0x1] }
  0x17   : > { %331 = vst.msk [vmem:[#allocation2] sm:$0xf] %vm330_vm2, %v314_v14  ;;  %v336_v17 = vsel %vm1470_vm4, %v315_v15, %v335_v4  ;;  %v340_v18 = vsel %vm1470_vm4, %v317_v16, %v339_v5  ;;  %v328_v19 = vld [vmem:[%s1468_s30 + $0x38] sm:$0xf]  ;;  %v366_v20 = vld [vmem:[%s300_s8] sm:$0xf] }
  0x18   : > { %v367_v21 = vld [vmem:[%s300_s8 + $0x4] sm:$0x1]  ;;  %337 = vst [vmem:[#allocation2 + $0x4] sm:$0x1] %v336_v17  ;;  %341 = vst [vmem:[#allocation2 + $0xc] sm:$0x1] %v340_v18 }
  0x19   : > { %362 = vst.msk [vmem:[#allocation2 + $0x38] sm:$0xf] %vm330_vm2, %v328_v19  ;;  %369 = vst.msk [vmem:[#allocation2 + $0x40] sm:$0xf] %vm330_vm2, %v366_v20  ;;  %v371_v22 = vsel %vm1470_vm4, %v367_v21, %v370_v7  ;;  %v319_v23 = vld [vmem:[%s1468_s30 + $0x14] sm:$0x1] }
  0x1a   : > { %v321_v24 = vld [vmem:[%s1468_s30 + $0x1c] sm:$0x1]  ;;  %372 = vst [vmem:[#allocation2 + $0x44] sm:$0x1] %v371_v22  ;;  %v344_v26 = vsel %vm1470_vm4, %v319_v23, %v343_v25  ;;  %v323_v28 = vld [vmem:[%s1468_s30 + $0x24] sm:$0x1] }
  0x1b   : > { %v325_v29 = vld [vmem:[%s1468_s30 + $0x2c] sm:$0x1]  ;;  %345 = vst [vmem:[#allocation2 + $0x14] sm:$0x1] %v344_v26  ;;  %v348_v30 = vsel %vm1470_vm4, %v321_v24, %v347_v27  ;;  %v327_v33 = vld [vmem:[%s1468_s30 + $0x34] sm:$0x1]  ;;  %v352_v34 = vsel %vm1470_vm4, %v323_v28, %v351_v31 }
  0x1c   : > { %349 = vst [vmem:[#allocation2 + $0x1c] sm:$0x1] %v348_v30  ;;  %v356_v35 = vsel %vm1470_vm4, %v325_v29, %v355_v32  ;;  %v329_v36 = vld [vmem:[%s1468_s30 + $0x3c] sm:$0x1]  ;;  %v1369_v39 = vld [vmem:[#allocation2 + $0x8] ss:$8 sps:$4 sm:$0xff]   ;;  %v360_v40 = vsel %vm1470_vm4, %v327_v33, %v359_v37 }
  0x1d   : > { %353 = vst [vmem:[#allocation2 + $0x24] sm:$0x1] %v352_v34  ;;  %357 = vst [vmem:[#allocation2 + $0x2c] sm:$0x1] %v356_v35  ;;  %v364_v41 = vsel %vm1470_vm4, %v329_v36, %v363_v38  ;;  %v1370_v42 = vld [vmem:[#allocation2 + $0x18] ss:$8 sps:$4 sm:$0xff]   ;;  %1299 = vmatprep.mubr.msk.bf16.mxu0 %vm527_vm3, %v1369_v39 }
  0x1e   : > { %361 = vst [vmem:[#allocation2 + $0x34] sm:$0x1] %v360_v40  ;;  %365 = vst [vmem:[#allocation2 + $0x3c] sm:$0x1] %v364_v41  ;;  %v1372_v43 = vld [vmem:[#allocation2 + $0x28] ss:$8 sps:$4 sm:$0xff]   ;;  %1300 = vmatmul.mubr.msk.bf16.vlgmr.msra.gmra.mrb[0].mxu0 %vm527_vm3, %v1370_v42 }
  0x1f   : > { %v1524_v44 = vld [vmem:[#allocation2] sm:$0xf]  ;;  %v1526_v45 = vld [vmem:[#allocation2 + $0x8] sm:$0xf]  ;;  %v383_v46 = vld [vmem:[#allocation2 + $0x4] sm:$0x1]  ;;  %1303 = vmatprep.mubr.msk.bf16.mxu0 %vm527_vm3, %v1372_v43  ;;  %1308 = vmatpush3.bf16.msra.mxu0 %v1463_v3 }
  0x20   : > { %v384_v47 = vld [vmem:[#allocation2 + $0xc] sm:$0x1]  ;;  %v395_v48 = vshrl.u32 %v1524_v44, 16  ;;  %v398_v49 = vshll.u32 %v1524_v44, 16  ;;  %v404_v50 = vshll.u32 %v383_v46, 16  ;;  %v409_v51 = vshrl.u32 %v1526_v45, 16 }
  0x21   : > { %v412_v52 = vshll.u32 %v1526_v45, 16  ;;  %v418_v53 = vshll.u32 %v384_v47, 16  ;;  %v1374_v58 = vld [vmem:[#allocation2 + $0x38] ss:$8 sps:$4 sm:$0xff]   ;;  %v1534_v61 = vld [vmem:[#allocation2 + $0x10] sm:$0xf] }
  0x22   : > { %v397_v54 = vrot.slane %v395_v48, 4  ;;  %v400_v55 = vrot.slane %v398_v49, 5  ;;  %v406_v56 = vrot.slane %v404_v50, 5  ;;  %v411_v57 = vrot.slane %v409_v51, 4  ;;  %v1536_v62 = vld [vmem:[#allocation2 + $0x18] sm:$0xf] }
  0x23   : > { %v414_v59 = vrot.slane %v412_v52, 5  ;;  %v420_v60 = vrot.slane %v418_v53, 5  ;;  %v385_v0 = vld [vmem:[#allocation2 + $0x14] sm:$0x1]  ;;  %v386_v1 = vld [vmem:[#allocation2 + $0x1c] sm:$0x1] }
  0x24   : > { %v401_v63 = vor.u32 %v400_v55, %v397_v54  ;;  %v423_v4 = vshrl.u32 %v1534_v61, 16  ;;  %v426_v3 = vshll.u32 %v1534_v61, 16  ;;  %v432_v7 = vshll.u32 %v385_v0, 16  ;;  %v831_v10 = vld [vmem:[#allocation2 + $0x8] sm:$0xf] }
  0x25   : > { %v415_v6 = vor.u32 %v414_v59, %v411_v57  ;;  %v437_v8 = vshrl.u32 %v1536_v62, 16  ;;  %v440_v9 = vshll.u32 %v1536_v62, 16  ;;  %v446_v14 = vshll.u32 %v386_v1, 16  ;;  %v832_v15 = vld [vmem:[#allocation2 + $0xc] sm:$0x1] }
  0x26   : > { %v402_v11 = vrot.slane %v401_v63, 4  ;;  %v425_v12 = vrot.slane %v423_v4, 4  ;;  %v428_v13 = vrot.slane %v426_v3, 5  ;;  %1304 = vmatmul.mubr.msk.bf16.gmra.mrb[4].mxu0 %vm527_vm3, %v1374_v58  ;;  %v434_v17 = vrot.slane %v432_v7, 5  ;;  %v833_v20 = vld [vmem:[#allocation2 + $0x10] sm:$0xf] }
  0x27   : > { %v416_v16 = vrot.slane %v415_v6, 4  ;;  %v439_v18 = vrot.slane %v437_v8, 4  ;;  %v442_v19 = vrot.slane %v440_v9, 5  ;;  %v448_v23 = vrot.slane %v446_v14, 5  ;;  %v834_v27 = vld [vmem:[#allocation2 + $0x14] sm:$0x1] }
  0x28   : > { %v407_v21 = vsel %vm1542_vm7, %v402_v11, %v406_v56  ;;  %v429_v22 = vor.u32 %v428_v13, %v425_v12  ;;  %v848_v24 = vshrl.u32 %v831_v10, 16  ;;  %v851_v28 = vshll.u32 %v831_v10, 16  ;;  %v1553_v30 = vld [vmem:[#allocation2 + $0x20] sm:$0xf]  ;;  %v387_v39 = vld [vmem:[#allocation2 + $0x24] sm:$0x1] }
  0x29   : > { %v421_v25 = vsel %vm1542_vm7, %v416_v16, %v420_v60  ;;  %v443_v26 = vor.u32 %v442_v19, %v439_v18  ;;  %v857_v29 = vshll.u32 %v832_v15, 16  ;;  %v862_v34 = vshrl.u32 %v833_v20, 16  ;;  %v1558_v43 = vld [vmem:[#allocation2 + $0x28] sm:$0xf]  ;;  %v388_v50 = vld [vmem:[#allocation2 + $0x2c] sm:$0x1] }
  0x2a   : > { %v1211_v31 = vcombine.low %v407_v21, %v421_v25  ;;  %v430_v32 = vrot.slane %v429_v22, 4  ;;  %v850_v33 = vrot.slane %v848_v24, 4  ;;  %v853_v36 = vrot.slane %v851_v28, 5  ;;  %v835_v52 = vld [vmem:[#allocation2 + $0x18] sm:$0xf] }
  0x2b   : > { %v444_v35 = vrot.slane %v443_v26, 4  ;;  %v859_v37 = vrot.slane %v857_v29, 5  ;;  %v865_v38 = vshll.u32 %v833_v20, 16  ;;  %v864_v41 = vrot.slane %v862_v34, 4  ;;  %v836_v63 = vld [vmem:[#allocation2 + $0x1c] sm:$0x1] }
  0x2c   : > { %1279 = vmatprep.mubr.msk.bf16.mxu1 %vm527_vm3, %v1211_v31  ;;  %v435_v40 = vsel %vm1542_vm7, %v430_v32, %v434_v17  ;;  %v871_v42 = vshll.u32 %v834_v27, 16  ;;  %v451_v46 = vshrl.u32 %v1553_v30, 16  ;;  %v854_v48 = vor.u32 %v853_v36, %v850_v33  ;;  %v837_v3 = vld [vmem:[#allocation2 + $0x20] sm:$0xf]  ;;  %v838_v13 = vld [vmem:[#allocation2 + $0x24] sm:$0x1] }
  0x2d   : > { %v449_v47 = vsel %vm1542_vm7, %v444_v35, %v448_v23  ;;  %v867_v49 = vrot.slane %v865_v38, 5  ;;  %v454_v51 = vshll.u32 %v1553_v30, 16  ;;  %v460_v56 = vshll.u32 %v387_v39, 16  ;;  %v1572_v20 = vld [vmem:[#allocation2 + $0x30] sm:$0xf] }
  0x2e   : > { %v1212_v53 = vcombine.low %v435_v40, %v449_v47  ;;  %v873_v54 = vrot.slane %v871_v42, 5  ;;  %v453_v55 = vrot.slane %v451_v46, 4  ;;  %v855_v57 = vrot.slane %v854_v48, 4  ;;  %v1574_v24 = vld [vmem:[#allocation2 + $0x38] sm:$0xf] }
  0x2f   : > { %v868_v58 = vor.u32 %v867_v49, %v864_v41  ;;  %v456_v59 = vrot.slane %v454_v51, 5  ;;  %v465_v60 = vshrl.u32 %v1558_v43, 16  ;;  %v462_v0 = vrot.slane %v460_v56, 5  ;;  %v389_v25 = vld [vmem:[#allocation2 + $0x34] sm:$0x1] }
  0x30   : > { %1280 = vmatmul.mubr.msk.bf16.vlgmr.msra.gmra.mrb[0].mxu1 %vm527_vm3, %v1212_v53  ;;  %v468_v1 = vshll.u32 %v1558_v43, 16  ;;  %v474_v4 = vshll.u32 %v388_v50, 16  ;;  %v876_v6 = vshrl.u32 %v835_v52, 16  ;;  %v860_v7 = vsel %vm1542_vm7, %v855_v57, %v859_v37  ;;  %v390_v36 = vld [vmem:[#allocation2 + $0x3c] sm:$0x1] }
  0x31   : > { %1288 = vmatpush3.bf16.msra.mxu1 %v1457_v2  ;;  %v869_v8 = vrot.slane %v868_v58, 4  ;;  %v457_v9 = vor.u32 %v456_v59, %v453_v55  ;;  %v467_v10 = vrot.slane %v465_v60, 4  ;;  %v879_v15 = vshll.u32 %v835_v52, 16  ;;  %v839_v47 = vld [vmem:[#allocation2 + $0x28] sm:$0xf] }
  0x32   : > { %v470_v11 = vrot.slane %v468_v1, 5  ;;  %v476_v12 = vrot.slane %v474_v4, 5  ;;  %v878_v14 = vrot.slane %v876_v6, 4  ;;  %v885_v18 = vshll.u32 %v836_v63, 16  ;;  %v840_v48 = vld [vmem:[#allocation2 + $0x2c] sm:$0x1] }
  0x33   : > { %v874_v16 = vsel %vm1542_vm7, %v869_v8, %v873_v54  ;;  %v458_v17 = vrot.slane %v457_v9, 4  ;;  %v890_v19 = vshrl.u32 %v837_v3, 16  ;;  %v881_v22 = vrot.slane %v879_v15, 5  ;;  %v841_v52 = vld [vmem:[#allocation2 + $0x30] sm:$0xf] }
  0x34   : > { %v1242_v2 = vcombine.low %v860_v7, %v874_v16  ;;  %v471_v21 = vor.u32 %v470_v11, %v467_v10  ;;  %v893_v23 = vshll.u32 %v837_v3, 16  ;;  %v887_v27 = vrot.slane %v885_v18, 5  ;;  %v842_v59 = vld [vmem:[#allocation2 + $0x34] sm:$0x1]  ;;  %v844_v10 = vld [vmem:[#allocation2 + $0x3c] sm:$0x1] }
  0x35   : > { %v463_v26 = vsel %vm1542_vm7, %v458_v17, %v462_v0  ;;  %v892_v28 = vrot.slane %v890_v19, 4  ;;  %v899_v29 = vshll.u32 %v838_v13, 16  ;;  %v882_v32 = vor.u32 %v881_v22, %v878_v14  ;;  %v845_v15 = vld [vmem:[#allocation2 + $0x40] sm:$0xf] }
  0x36   : > { %1309 = vmatprep.mubr.msk.bf16.mxu0 %vm527_vm3, %v1242_v2  ;;  %v472_v31 = vrot.slane %v471_v21, 4  ;;  %v895_v33 = vrot.slane %v893_v23, 5  ;;  %v479_v34 = vshrl.u32 %v1572_v20, 16  ;;  %v482_v37 = vshll.u32 %v1572_v20, 16  ;;  %v1251_v5 = vld [vmem:[%s1655_s3] ss:$0 sm:$0xff] }
  0x37   : > { %v901_v35 = vrot.slane %v899_v29, 5  ;;  %v488_v38 = vshll.u32 %v389_v25, 16  ;;  %v493_v39 = vshrl.u32 %v1574_v24, 16  ;;  %v883_v41 = vrot.slane %v882_v32, 4 }
  0x38   : > { %v477_v40 = vsel %vm1542_vm7, %v472_v31, %v476_v12  ;;  %v896_v42 = vor.u32 %v895_v33, %v892_v28  ;;  %v481_v46 = vrot.slane %v479_v34, 4  ;;  %v484_v50 = vrot.slane %v482_v37, 5 }
  0x39   : > { %v1213_v49 = vcombine.low %v463_v26, %v477_v40  ;;  %v495_v51 = vrot.slane %v493_v39, 4  ;;  %v1220_v53 = vcombine.low %v1524_v44, %v1526_v45  ;;  %v888_v54 = vsel %vm1542_vm7, %v883_v41, %v887_v27  ;;  %v843_v45 = vld [vmem:[#allocation2 + $0x38] sm:$0xf]  ;;  %v846_v26 = vld [vmem:[#allocation2 + $0x44] sm:$0x1] }
  0x3a   : > { %v897_v55 = vrot.slane %v896_v42, 4  ;;  %v496_v56 = vshll.u32 %v1574_v24, 16  ;;  %v502_v57 = vshll.u32 %v390_v36, 16  ;;  %v485_v58 = vor.u32 %v484_v50, %v481_v46 }
  0x3b   : > { %1283 = vmatprep.mubr.msk.bf16.mxu1 %vm527_vm3, %v1213_v49  ;;  %v904_v60 = vshrl.u32 %v839_v47, 16  ;;  %v907_v63 = vshll.u32 %v839_v47, 16  ;;  %v913_v0 = vshll.u32 %v840_v48, 16  ;;  %v490_v4 = vrot.slane %v488_v38, 5 }
  0x3c   : > { %v902_v1 = vsel %vm1542_vm7, %v897_v55, %v901_v35  ;;  %v498_v3 = vrot.slane %v496_v56, 5  ;;  %v918_v44 = vshrl.u32 %v841_v52, 16  ;;  %v486_v7 = vrot.slane %v485_v58, 4 }
  0x3d   : > { %v1243_v6 = vcombine.low %v888_v54, %v902_v1  ;;  %v906_v8 = vrot.slane %v904_v60, 4  ;;  %v909_v9 = vrot.slane %v907_v63, 5  ;;  %v504_v12 = vrot.slane %v502_v57, 5 }
  0x3e   : > { %v499_v11 = vor.u32 %v498_v3, %v495_v51  ;;  %v920_v13 = vrot.slane %v918_v44, 4  ;;  %v921_v14 = vshll.u32 %v841_v52, 16  ;;  %v915_v17 = vrot.slane %v913_v0, 5 }
  0x3f   : > { %1310 = vmatmul.mubr.msk.bf16.vlgmr.msra.gmra.mrb[0].mxu0 %vm527_vm3, %v1243_v6  ;;  %v910_v16 = vor.u32 %v909_v9, %v906_v8  ;;  %v927_v18 = vshll.u32 %v842_v59, 16  ;;  %v932_v19 = vshrl.u32 %v843_v45, 16  ;;  %v491_v2 = vsel %vm1542_vm7, %v486_v7, %v490_v4 }
  0x40   : > { %v500_v21 = vrot.slane %v499_v11, 4  ;;  %v923_v22 = vrot.slane %v921_v14, 5  ;;  %v935_v23 = vshll.u32 %v843_v45, 16  ;;  %v941_v28 = vshll.u32 %v844_v10, 16 }
  0x41   : > { %v911_v25 = vrot.slane %v910_v16, 4  ;;  %v934_v27 = vrot.slane %v932_v19, 4  ;;  %v946_v29 = vshrl.u32 %v845_v15, 16  ;;  %v929_v33 = vrot.slane %v927_v18, 5 }
  0x42   : > { %v505_v31 = vsel %vm1542_vm7, %v500_v21, %v504_v12  ;;  %v924_v32 = vor.u32 %v923_v22, %v920_v13  ;;  %v937_v34 = vrot.slane %v935_v23, 5  ;;  %v949_v37 = vshll.u32 %v845_v15, 16 }
  0x43   : > { %v1214_v35 = vcombine.low %v491_v2, %v505_v31  ;;  %v948_v36 = vrot.slane %v946_v29, 4  ;;  %v916_v38 = vsel %vm1542_vm7, %v911_v25, %v915_v17  ;;  %v955_v41 = vshll.u32 %v846_v26, 16 }
  0x44   : > { %v925_v39 = vrot.slane %v924_v32, 4  ;;  %v938_v40 = vor.u32 %v937_v34, %v934_v27  ;;  %v943_v42 = vrot.slane %v941_v28, 5  ;;  %v951_v46 = vrot.slane %v949_v37, 5 }
  0x45   : > { %1284 = vmatmul.mubr.msk.bf16.gmra.mrb[4].mxu1 %vm527_vm3, %v1214_v35  ;;  %v957_v51 = vrot.slane %v955_v41, 5  ;;  %v1221_v55 = vcombine.low %v1534_v61, %v1536_v62  ;;  %v1222_v56 = vcombine.low %v1553_v30, %v1558_v43  ;;  %v1223_v58 = vcombine.low %v1572_v20, %v1574_v24 }
  0x46   : > { %v930_v47 = vsel %vm1542_vm7, %v925_v39, %v929_v33  ;;  %1289 = vmatprep.mubr.msk.bf16.mxu1 %vm527_vm3, %v1220_v53  ;;  %v939_v48 = vrot.slane %v938_v40, 4  ;;  %v952_v50 = vor.u32 %v951_v46, %v948_v36 }
  0x47   : > { %v1244_v49 = vcombine.low %v916_v38, %v930_v47 }
  0x48   : > { %v944_v52 = vsel %vm1542_vm7, %v939_v48, %v943_v42  ;;  %v953_v54 = vrot.slane %v952_v50, 4 }
  0x49   : > { %1313 = vmatprep.mubr.msk.bf16.mxu0 %vm527_vm3, %v1244_v49 }
  0x4a   : > { %v958_v53 = vsel %vm1542_vm7, %v953_v54, %v957_v51 }
  0x4b   : > { %v1245_v57 = vcombine.low %v944_v52, %v958_v53 }
  0x4d   : > { %1290 = vmatmul.mubr.msk.bf16.vlgmr.msra.gmra.mrb[0].mxu1 %vm527_vm3, %v1221_v55  ;;  %1314 = vmatmul.mubr.msk.bf16.gmra.mrb[4].mxu0 %vm527_vm3, %v1245_v57 }
  0x4e   : > { %1293 = vmatprep.mubr.msk.bf16.mxu1 %vm527_vm3, %v1222_v56 }
  0x55   : > { %1294 = vmatmul.mubr.msk.bf16.gmra.mrb[4].mxu1 %vm527_vm3, %v1223_v58 }
 0x112   : > { %v1311_v59 = vpop.f32.mrb[0].mxu0 }
 0x113   : > { %v1026_v61 = vpop.f32.mrb[1].mxu0 }
 0x114   : > { %v1312_v62 = vpop.f32.mrb[2].mxu0 }
 0x115   : > { %v1029_v60 = vpop.f32.mrb[3].mxu0 }
 0x120   : > { %v1291_v30 = vpop.f32.mrb[0].mxu1  ;;  %v1315_v43 = vpop.f32.mrb[4].mxu0 }
 0x121   : > { %v1317_v63 = vadd.f32 %v1311_v59, %v1291_v30  ;;  %v677_v0 = vpop.f32.mrb[1].mxu1  ;;  %v1042_v20 = vpop.f32.mrb[5].mxu0 }
 0x122   : > { %v1318_v24 = vadd.f32 %v1026_v61, %v677_v0  ;;  %v1292_v1 = vpop.f32.mrb[2].mxu1  ;;  %v1316_v3 = vpop.f32.mrb[6].mxu0 }
 0x123   : > { %v1074_v4 = vadd.f32 %v1317_v63, %v1251_v5  ;;  %v1319_v44 = vadd.f32 %v1312_v62, %v1292_v1  ;;  %v680_v45 = vpop.f32.mrb[3].mxu1  ;;  %v1045_v7 = vpop.f32.mrb[7].mxu0 }
 0x124   : > { %v1072_v6 = vadd.f32 %v1318_v24, %v1251_v5  ;;  %v1320_v8 = vadd.f32 %v1029_v60, %v680_v45 }
 0x125   : > { %1083 = vst.msk [vmem:[%s1625_s14 + $0x10] sm:$0xff] %vm1080_vm8, %v1074_v4  ;;  %v1075_v9 = vadd.f32 %v1319_v44, %v1251_v5 }
 0x126   : > { %1081 = vst.msk [vmem:[%s1625_s14] sm:$0xff] %vm1080_vm8, %v1072_v6  ;;  %v1073_v10 = vadd.f32 %v1320_v8, %v1251_v5 }
 0x127   : > { %1084 = vst.msk [vmem:[%s1625_s14 + $0x18] sm:$0xff] %vm1080_vm8, %v1075_v9 }
 0x128   : > { %1082 = vst.msk [vmem:[%s1625_s14 + $0x8] sm:$0xff] %vm1080_vm8, %v1073_v10  ;;  %v1295_v11 = vpop.f32.mrb[4].mxu1 }
 0x129   : > { %v1321_v12 = vadd.f32 %v1315_v43, %v1295_v11  ;;  %v693_v13 = vpop.f32.mrb[5].mxu1 }
 0x12a   : > { %v1322_v14 = vadd.f32 %v1042_v20, %v693_v13  ;;  %v1296_v15 = vpop.f32.mrb[6].mxu1 }
 0x12b   : > { %v1078_v16 = vadd.f32 %v1321_v12, %v1251_v5  ;;  %v1323_v17 = vadd.f32 %v1316_v3, %v1296_v15  ;;  %v696_v18 = vpop.f32.mrb[7].mxu1 }
 0x12c   : > { %v1076_v19 = vadd.f32 %v1322_v14, %v1251_v5  ;;  %v1324_v2 = vadd.f32 %v1045_v7, %v696_v18 }
 0x12d   : > { %1087 = vst.msk [vmem:[%s1625_s14 + $0x30] sm:$0xff] %vm1080_vm8, %v1078_v16  ;;  %v1079_v21 = vadd.f32 %v1323_v17, %v1251_v5 }
 0x12e   : > { %1085 = vst.msk [vmem:[%s1625_s14 + $0x20] sm:$0xff] %vm1080_vm8, %v1076_v19  ;;  %v1077_v22 = vadd.f32 %v1324_v2, %v1251_v5 }
 0x12f   : > { %1088 = vst.msk [vmem:[%s1625_s14 + $0x38] sm:$0xff] %vm1080_vm8, %v1079_v21 }
 0x130   : > { %1086 = vst.msk [vmem:[%s1625_s14 + $0x28] sm:$0xff] %vm1080_vm8, %v1077_v22 }
 0x131 PF: > { %s14_s17 = sadd.s32 1, %s1401_s17   ;;  %s1661_s15 = smov %s1397_s16 }
 0x132   : > { %p11_p5 = scmp.ge.s32.totalorder %s14_s17, 4   ;;  %s1662_s16 = smov %s1664_s18 }
 0x134   :  { %13 = sbr.rel (!%p11_p5) target bundleno = 2 (0x2), region = 74 }

</bundles_post_ra>
